<compile_context>
chip_gen: v7x
topology: tpu7x:2x2x1
jax: 0.10.0
libtpu: 0.0.40
codegen_flags: <defaults>
</compile_context>

<pallas_src>
import functools
import math

import jax
import jax.numpy as jnp
from jax.experimental import pallas as pl
from jax.experimental.pallas import tpu as pltpu

_LANE = 128


def _round_up(x, m):
    return (x + m - 1) // m * m


@functools.lru_cache(maxsize=None)
def _vmem_cap_bytes():
    """Device-dependent scoped-VMEM limit (review: raise cap off v7x)."""
    try:
        kind = jax.devices()[0].device_kind.lower()
    except Exception:  # pragma: no cover - defensive
        kind = ""
    if "7" in kind:                      # v7x: 64 MiB physical VMEM per TensorCore
        return 48 * 1024 * 1024
    return 100 * 1024 * 1024             # v5e / v6e: 128 MiB physical


# ---------------------------------------------------------------------------
# Pallas kernels
# ---------------------------------------------------------------------------
def _stem_matmul_kernel(x_ref, w_ref, sb_ref, o_ref, *, activation):
    """Single-shot fused  out = act((x @ w) * scale + bias)  (full K, no grid reduce)."""
    acc = jnp.dot(x_ref[...], w_ref[...], preferred_element_type=jnp.float32)
    acc = acc * sb_ref[0:1, :] + sb_ref[1:2, :]
    if activation == "relu":
        acc = jnp.maximum(acc, 0.0)
    o_ref[...] = acc.astype(o_ref.dtype)


def _bottleneck_kernel(x_ref, w1_ref, sb1_ref, w2_ref, sb2_ref, w3_ref, sb3_ref,
                       *rest, l_real, l_blk, has_ds):
    """One full ResidualBlock per invocation (one batch element), all in VMEM.

    x_ref:   (1, l_blk, Cin_p)  bf16, rows >= l_real are exactly zero
    w*_ref:  pre-padded bf16 weights, sb*_ref: (2, C) f32 folded-BN scale/bias
    out:     (1, l_blk, C4_p)   bf16, rows >= l_real written as exact zero
    """
    if has_ds:
        wds_ref, sbds_ref, o_ref = rest
    else:
        (o_ref,) = rest

    x = x_ref[0]                                              # (l_blk, Cin_p) bf16

    # ---- conv1: 1x1 conv + folded BN + ReLU (full-K dot, f32 epilogue) ----
    h = jnp.dot(x, w1_ref[...], preferred_element_type=jnp.float32)
    h = jnp.maximum(h * sb1_ref[0:1, :] + sb1_ref[1:2, :], 0.0)
    if l_real < l_blk:
        # zero the padded rows so conv2's halo taps see true zero padding
        rows_h = jax.lax.broadcasted_iota(jnp.int32, h.shape, 0)
        h = jnp.where(rows_h < l_real, h, 0.0)
    h = h.astype(jnp.bfloat16)

    # ---- conv2: 3-tap conv (stride 1, pad 1) + folded BN + ReLU ----
    # Taps are computed on the unshifted input; the spatial +-1 shift is applied to
    # the tap outputs with pltpu.roll (XLU) + boundary masks (exact zero padding).
    y0 = jnp.dot(h, w2_ref[0], preferred_element_type=jnp.float32)   # uses in[t-1]
    acc = jnp.dot(h, w2_ref[1], preferred_element_type=jnp.float32)  # uses in[t]
    y2 = jnp.dot(h, w2_ref[2], preferred_element_type=jnp.float32)   # uses in[t+1]
    rows = jax.lax.broadcasted_iota(jnp.int32, acc.shape, 0)
    down = pltpu.roll(y0, shift=1, axis=0)                    # down[i] = y0[i-1]
    down = jnp.where(rows == 0, 0.0, down)
    up = pltpu.roll(y2, shift=l_blk - 1, axis=0)              # up[i] = y2[i+1 mod l_blk]
    up = jnp.where(rows == l_blk - 1, 0.0, up)
    acc = acc + down + up
    h2 = jnp.maximum(acc * sb2_ref[0:1, :] + sb2_ref[1:2, :], 0.0).astype(jnp.bfloat16)

    # ---- conv3: 1x1 conv + folded BN (no activation yet) ----
    out = jnp.dot(h2, w3_ref[...], preferred_element_type=jnp.float32)
    out = out * sb3_ref[0:1, :] + sb3_ref[1:2, :]

    # ---- residual path (+ optional downsample conv/BN), add, block ReLU ----
    if has_ds:
        r = jnp.dot(x, wds_ref[...], preferred_element_type=jnp.float32)
        r = r * sbds_ref[0:1, :] + sbds_ref[1:2, :]
    else:
        r = x.astype(jnp.float32)
    out = jnp.maximum(out + r, 0.0)

    if l_real < l_blk:
        # keep padded rows exactly zero so the next block / avgpool stay clean
        rows_o = jax.lax.broadcasted_iota(jnp.int32, out.shape, 0)
        out = jnp.where(rows_o < l_real, out, 0.0)
    o_ref[0] = out.astype(o_ref.dtype)


# ---------------------------------------------------------------------------
# Pallas wrappers
# ---------------------------------------------------------------------------
def stem_conv_bn_relu(x, p, stride=2, padding=3):
    """k=7 stem conv via tiny JAX-side im2col + one single-shot fused matmul."""
    B, L, C = x.shape
    k = p["k"]
    L_out = (L + 2 * padding - k) // stride + 1
    xpad = jnp.pad(x, ((0, 0), (padding, padding), (0, 0)))
    cols = [xpad[:, t: t + stride * (L_out - 1) + 1: stride, :] for t in range(k)]
    col = jnp.stack(cols, axis=2).reshape(B * L_out, k * C)
    Kp, Np = p["w"].shape
    if col.shape[1] != Kp:
        col = jnp.pad(col, ((0, 0), (0, Kp - col.shape[1])))
    M = B * L_out

    out = pl.pallas_call(
        functools.partial(_stem_matmul_kernel, activation="relu"),
        out_shape=jax.ShapeDtypeStruct((M, Np), jnp.bfloat16),
        grid_spec=pltpu.PrefetchScalarGridSpec(
            num_scalar_prefetch=0,
            grid=(1,),
            in_specs=[
                pl.BlockSpec((M, Kp), lambda i: (0, 0)),
                pl.BlockSpec((Kp, Np), lambda i: (0, 0)),
                pl.BlockSpec((2, Np), lambda i: (0, 0)),
            ],
            out_specs=pl.BlockSpec((M, Np), lambda i: (0, 0)),
        ),
        compiler_params=pltpu.CompilerParams(
            dimension_semantics=("arbitrary",),
            vmem_limit_bytes=_vmem_cap_bytes(),
        ),
    )(col, p["w"], p["sb"])
    return out.reshape(B, L_out, Np), L_out


def residual_block(x, blk, l_real):
    """One fused pallas_call per ResidualBlock. x: (B, l_blk, Cin_p) bf16."""
    stride = blk["stride"]
    if stride > 1:
        # stride shared by conv1 and downsample -> one tiny (KB) slice feeds the call
        x = x[:, ::stride, :]
        l_real = (l_real - 1) // stride + 1

    B = x.shape[0]
    l_blk = _round_up(max(l_real, 1), 8)           # sublane-aligned M for all dots
    if x.shape[1] < l_blk:
        x = jnp.pad(x, ((0, 0), (0, l_blk - x.shape[1]), (0, 0)))
    elif x.shape[1] > l_blk:
        x = x[:, :l_blk, :]

    Cin_p = x.shape[2]
    w1, sb1 = blk["c1"]["w"], blk["c1"]["sb"]
    w2, sb2 = blk["c2"]["w"], blk["c2"]["sb"]
    w3, sb3 = blk["c3"]["w"], blk["c3"]["sb"]
    P_p = w1.shape[1]
    C4_p = w3.shape[1]
    has_ds = blk["downsample"] is not None

    args = [x, w1, sb1, w2, sb2, w3, sb3]
    in_specs = [
        pl.BlockSpec((1, l_blk, Cin_p), lambda b: (b, 0, 0)),
        pl.BlockSpec((Cin_p, P_p), lambda b: (0, 0)),
        pl.BlockSpec((2, P_p), lambda b: (0, 0)),
        pl.BlockSpec((3, P_p, P_p), lambda b: (0, 0, 0)),
        pl.BlockSpec((2, P_p), lambda b: (0, 0)),
        pl.BlockSpec((P_p, C4_p), lambda b: (0, 0)),
        pl.BlockSpec((2, C4_p), lambda b: (0, 0)),
    ]
    if has_ds:
        args += [blk["downsample"]["w"], blk["downsample"]["sb"]]
        in_specs += [
            pl.BlockSpec((Cin_p, C4_p), lambda b: (0, 0)),
            pl.BlockSpec((2, C4_p), lambda b: (0, 0)),
        ]

    out = pl.pallas_call(
        functools.partial(_bottleneck_kernel, l_real=l_real, l_blk=l_blk, has_ds=has_ds),
        out_shape=jax.ShapeDtypeStruct((B, l_blk, C4_p), jnp.bfloat16),
        grid_spec=pltpu.PrefetchScalarGridSpec(
            num_scalar_prefetch=0,
            grid=(B,),                                      # >=2 parallel tiles (v7x)
            in_specs=in_specs,
            out_specs=pl.BlockSpec((1, l_blk, C4_p), lambda b: (b, 0, 0)),
        ),
        compiler_params=pltpu.CompilerParams(
            dimension_semantics=("parallel",),
            vmem_limit_bytes=_vmem_cap_bytes(),
        ),
    )(*args)
    return out, l_real


# ---------------------------------------------------------------------------
# Trivial mem-bound ops: plain XLA (cheaper than a Pallas launch)
# ---------------------------------------------------------------------------
def maxpool1d(x, kernel=3, stride=2, padding=1):
    """nn.MaxPool1d semantics (implicit -inf padding). x: (B, L, C)."""
    B, L, C = x.shape
    xp = jnp.pad(x, ((0, 0), (padding, padding), (0, 0)), constant_values=-jnp.inf)
    L_out = (L + 2 * padding - kernel) // stride + 1
    out = xp[:, 0:stride * (L_out - 1) + 1:stride, :]
    for t in range(1, kernel):
        out = jnp.maximum(out, xp[:, t:t + stride * (L_out - 1) + 1:stride, :])
    return out, L_out


# ---------------------------------------------------------------------------
# Parameter construction (deterministic, synthetic, pre-padded / pre-cast)
# ---------------------------------------------------------------------------
def _conv_bn_params(key, cin, cout, k):
    kw, kb, kg, kbe, km, kv = jax.random.split(key, 6)
    fan_in = cin * k
    w = jax.random.normal(kw, (cout, cin, k), jnp.float32) / math.sqrt(fan_in)
    b = 0.01 * jax.random.normal(kb, (cout,), jnp.float32)
    gamma = 1.0 + 0.1 * jax.random.normal(kg, (cout,), jnp.float32)
    beta = 0.1 * jax.random.normal(kbe, (cout,), jnp.float32)
    r_mean = 0.1 * jax.random.normal(km, (cout,), jnp.float32)
    r_var = 1.0 + 0.1 * jax.random.uniform(kv, (cout,), jnp.float32)
    eps = 1e-5
    s = gamma / jnp.sqrt(r_var + eps)
    bias = b * s + (beta - r_mean * s)            # folded conv-bias + BN shift

    cin_p = _round_up(cin, _LANE)
    cout_p = _round_up(cout, _LANE)
    sb = jnp.zeros((2, cout_p), jnp.float32)
    sb = sb.at[0, :cout].set(s).at[1, :cout].set(bias)

    if k == 1:
        wmat = jnp.transpose(w[:, :, 0], (1, 0))                       # (cin, cout)
        wp = jnp.zeros((cin_p, cout_p), jnp.bfloat16)
        wp = wp.at[:cin, :cout].set(wmat.astype(jnp.bfloat16))
        return dict(k=1, w=wp, sb=sb)
    if k == 3:
        w3 = jnp.transpose(w, (2, 1, 0))                               # (k, cin, cout)
        wp = jnp.zeros((k, cin_p, cout_p), jnp.bfloat16)
        wp = wp.at[:, :cin, :cout].set(w3.astype(jnp.bfloat16))
        return dict(k=3, w=wp, sb=sb)
    # generic k (stem conv): im2col layout, rows ordered (tap, cin)
    wmat = jnp.transpose(w, (2, 1, 0)).reshape(k * cin, cout)
    kp = _round_up(k * cin, _LANE)
    wp = jnp.zeros((kp, cout_p), jnp.bfloat16)
    wp = wp.at[:k * cin, :cout].set(wmat.astype(jnp.bfloat16))
    return dict(k=k, w=wp, sb=sb)


def init_params(key, input_channels, layers=(3, 4, 6, 3), num_classes=1):
    keys = iter(jax.random.split(key, 256))
    params = {"conv1": _conv_bn_params(next(keys), input_channels, 64, 7)}
    input_planes = 64

    def make_layer(planes, blocks, stride):
        nonlocal input_planes
        out = []
        for i in range(blocks):
            s = stride if i == 0 else 1
            ds = None
            if i == 0 and (stride != 1 or input_planes != planes * 4):
                ds = _conv_bn_params(next(keys), input_planes, planes * 4, 1)
            blk = dict(
                stride=s,
                downsample=ds,
                c1=_conv_bn_params(next(keys), input_planes, planes, 1),
                c2=_conv_bn_params(next(keys), planes, planes, 3),
                c3=_conv_bn_params(next(keys), planes, planes * 4, 1),
            )
            input_planes = planes * 4
            out.append(blk)
        return out

    params["layer0"] = make_layer(64, layers[0], 1)
    params["layer1"] = make_layer(128, layers[1], 2)
    params["layer2"] = make_layer(256, layers[2], 2)
    params["layer3"] = make_layer(512, layers[3], 2)

    kfw, kfb = jax.random.split(next(keys))
    fcw = jax.random.normal(kfw, (512 * 4, num_classes), jnp.float32) / math.sqrt(512 * 4)
    fcb = 0.01 * jax.random.normal(kfb, (num_classes,), jnp.float32)
    params["fc"] = dict(w=fcw, b=fcb, n=num_classes)
    return params


# ---------------------------------------------------------------------------
# Forward pass (matches ResNet.forward semantics)
# ---------------------------------------------------------------------------
def resnet_forward(x, params):
    # x: (B, 1, C_in, L) like the torch input; squeeze(1) -> (B, C_in, L)
    x = jnp.squeeze(x, axis=1)
    x = jnp.transpose(x, (0, 2, 1)).astype(jnp.bfloat16)      # (B, L, C) channels-last

    x, _ = stem_conv_bn_relu(x, params["conv1"], stride=2, padding=3)
    x, l_real = maxpool1d(x, kernel=3, stride=2, padding=1)

    # pad L once per stage to a sublane multiple; padded rows stay exactly zero
    l_blk = _round_up(max(l_real, 1), 8)
    if x.shape[1] < l_blk:
        x = jnp.pad(x, ((0, 0), (0, l_blk - x.shape[1]), (0, 0)))

    for name in ("layer0", "layer1", "layer2", "layer3"):
        for blk in params[name]:
            x, l_real = residual_block(x, blk, l_real)

    # AdaptiveAvgPool1d(1): padded rows are zero, divide by the true length
    pooled = jnp.sum(x.astype(jnp.float32), axis=1) / float(l_real)   # (B, 2048)

    # Final FC + sigmoid: tiny GEMV -> plain XLA (per perf review)
    fc = params["fc"]
    logits = jax.nn.sigmoid(pooled @ fc["w"] + fc["b"])               # (B, num_classes)
    return logits.reshape(-1)                    # matches torch's x.view(-1)


# ---------------------------------------------------------------------------
if __name__ == "__main__":
    key = jax.random.PRNGKey(0)
    k_x, k_p = jax.random.split(key)

    B, C_in, L = 2, 4, 16
    x = jax.random.normal(k_x, (B, 1, C_in, L), jnp.float32)

    params = init_params(k_p, input_channels=C_in, layers=(3, 4, 6, 3), num_classes=1)

    y = resnet_forward(x, params)
    y = jax.block_until_ready(y)

    assert y.shape == (B,), y.shape
    assert bool(jnp.all(jnp.isfinite(y)))
    print("KERNEL_OK")
</pallas_src>

<mosaic_0001>
module attributes {stable_mosaic.version = 11 : i64} {
  func.func @_stem_matmul_kernel(%arg0: i32, %arg1: memref<16x128xbf16, #tpu.memory_space<vmem>>, %arg2: memref<128x128xbf16, #tpu.memory_space<vmem>>, %arg3: memref<2x128xf32, #tpu.memory_space<vmem>>, %arg4: memref<16x128xbf16, #tpu.memory_space<vmem>>) attributes {dimension_semantics = [#tpu.dimension_semantics<arbitrary>], iteration_bounds = array<i64: 1>, scalar_prefetch = 0 : i64, scratch_operands = 0 : i64, tpu.core_type = #tpu.core_type<tc>, window_params = [{pipeline_mode = #tpu.pipeline_mode<synchronous>, transform_indices = @transform_0, window_bounds = array<i64: 16, 128>}, {pipeline_mode = #tpu.pipeline_mode<synchronous>, transform_indices = @transform_1, window_bounds = array<i64: 128, 128>}, {pipeline_mode = #tpu.pipeline_mode<synchronous>, transform_indices = @transform_2, window_bounds = array<i64: 2, 128>}, {pipeline_mode = #tpu.pipeline_mode<synchronous>, transform_indices = @transform_3, window_bounds = array<i64: 16, 128>}]} {
    %c0 = arith.constant 0 : index
    %c0_0 = arith.constant 0 : index
    %0 = vector.load %arg1[%c0, %c0_0] : memref<16x128xbf16, #tpu.memory_space<vmem>>, vector<16x128xbf16>
    %c0_1 = arith.constant 0 : index
    %c0_2 = arith.constant 0 : index
    %1 = vector.load %arg2[%c0_1, %c0_2] : memref<128x128xbf16, #tpu.memory_space<vmem>>, vector<128x128xbf16>
    %cst = arith.constant dense<0.000000e+00> : vector<16x128xf32>
    %2 = tpu.matmul %0, %1, %cst {dimension_numbers = #tpu.dot_dimension_numbers<[1], [0], [0], [1], [0, 0, 1, 1], [], []>} : vector<16x128xbf16>, vector<128x128xbf16>, vector<16x128xf32> -> vector<16x128xf32>
    %c0_3 = arith.constant 0 : index
    %c0_4 = arith.constant 0 : index
    %3 = vector.load %arg3[%c0_3, %c0_4] : memref<2x128xf32, #tpu.memory_space<vmem>>, vector<1x128xf32>
    %4 = vector.broadcast %3 : vector<1x128xf32> to vector<16x128xf32>
    %5 = arith.mulf %2, %4 : vector<16x128xf32>
    %c1 = arith.constant 1 : index
    %c0_5 = arith.constant 0 : index
    %6 = vector.load %arg3[%c1, %c0_5] : memref<2x128xf32, #tpu.memory_space<vmem>>, vector<1x128xf32>
    %7 = vector.broadcast %6 : vector<1x128xf32> to vector<16x128xf32>
    %8 = arith.addf %5, %7 : vector<16x128xf32>
    %cst_6 = arith.constant 0.000000e+00 : f32
    %9 = vector.broadcast %cst_6 : f32 to vector<16x128xf32>
    %10 = arith.maximumf %8, %9 : vector<16x128xf32>
    %11 = arith.truncf %10 : vector<16x128xf32> to vector<16x128xbf16>
    %c0_7 = arith.constant 0 : index
    %c0_8 = arith.constant 0 : index
    %12 = vector.load %arg4[%c0_7, %c0_8] : memref<16x128xbf16, #tpu.memory_space<vmem>>, vector<16x128xbf16>
    tpu.vector_store %arg4[%c0_7, %c0_8], %11 {strides = array<i32>} : memref<16x128xbf16, #tpu.memory_space<vmem>>, vector<16x128xbf16>,
    return
  }
  func.func @transform_0(%arg0: i32) -> (i32, i32) {
    %c0_i32 = arith.constant 0 : i32
    %c0_i32_0 = arith.constant 0 : i32
    %c0_i32_1 = arith.constant 0 : i32
    return %c0_i32, %c0_i32_0 : i32, i32
  }
  func.func @transform_1(%arg0: i32) -> (i32, i32) {
    %c0_i32 = arith.constant 0 : i32
    %c0_i32_0 = arith.constant 0 : i32
    %c0_i32_1 = arith.constant 0 : i32
    return %c0_i32, %c0_i32_0 : i32, i32
  }
  func.func @transform_2(%arg0: i32) -> (i32, i32) {
    %c0_i32 = arith.constant 0 : i32
    %c0_i32_0 = arith.constant 0 : i32
    %c0_i32_1 = arith.constant 0 : i32
    return %c0_i32, %c0_i32_0 : i32, i32
  }
  func.func @transform_3(%arg0: i32) -> (i32, i32) {
    %c0_i32 = arith.constant 0 : i32
    %c0_i32_0 = arith.constant 0 : i32
    %c0_i32_1 = arith.constant 0 : i32
    return %c0_i32, %c0_i32_0 : i32, i32
  }
}

</mosaic_0001>

<bundles_post_ra>
// kernel: tpu_custom_call.1
= control target key start
LH: loop header
LB: loop body
LE: loop exit
PB: predicated region body
PF: predicated region fallthrough
CT: control target
= control target key end

     0   :  { %8 = vsyncpa [#allocation3], 0  ;;  %s464_s0 = inlined_call_operand.hbm [shape: bf16[16,128], index: 0, kind: input, shape index: {}]   ;;  %s465_s1 = inlined_call_operand.hbm [shape: bf16[128,128], index: 1, kind: input, shape index: {}]   ;;  %s466_s2 = inlined_call_operand.hbm [shape: f32[2,128], index: 2, kind: input, shape index: {}]   ;;  %s467_s3 = inlined_call_operand.hbm [shape: bf16[16,128], index: 3, kind: output, shape index: {}]  }
   0x1   :  { %9 = vsyncpa [#allocation6], 0 }
   0x2   :  { %10 = vsyncpa [#allocation4], 0  ;;  %s372_s12 = smov [#allocation5]   ;;  %s373_s14 = smov [#allocation2]  }
   0x3   :  { %s28_s13 = sshll.u32 %s372_s12, 4  ;;  %s16_s15 = sshll.u32 %s373_s14, 4  ;;  %s29_s13 = int_to_ptr.vmem [resolvable:$true] %s28_s13  ;;  %s400_s15 = int_to_ptr.vmem [resolvable:$true] %s16_s15 }
   0x4   :  { %s278_s18 = scalar_lea.hbm %s465_s1, 1024 }
   0x5   :  { %p279_p0 = scmp.ne.s32.totalorder %s465_s1, %s278_s18  ;;  %p282_p1 = scmp.lt.u32.totalorder %s278_s18, %s465_s1 }
   0x7   :  { %p284_p2 = pnand %p282_p1, %p279_p0 }
   0x9   :  { %287 = shalt.err (!%p284_p2)
}
   0xa   :  { %s288_s23 = scalar_lea.vmem %s29_s13, 1024  ;;  %p293_p4 = scmp.lt.s32.totalorder %s29_s13, %s29_s13 }
   0xb   :  { %p289_p3 = scmp.ne.s32.totalorder %s29_s13, %s288_s23  ;;  %p294_p5 = scmp.lt.s32.totalorder %s288_s23, %s288_s23 }
   0xd   :  { %p295_p6 = por %p294_p5, %p293_p4 }
   0xf   :  { %p296_p7 = pnand %p295_p6, %p289_p3 }
  0x11   :  { %299 = shalt.err (!%p296_p7)
}
  0x12   :  { %s374_s24 = smov 64   ;;  %s375_s25 = smov 4  }
  0x13   :  { %34 = dma.hbm_to_vmem [thread:$0]  %s465_s1, 1024, %s29_s13, [#allocation6], %s374_s24, %s374_s24, %s375_s25  }
  0x14   :  { %s300_s30 = scalar_lea.hbm %s464_s0, 128 }
  0x15   :  { %p301_p8 = scmp.ne.s32.totalorder %s464_s0, %s300_s30  ;;  %p304_p9 = scmp.lt.u32.totalorder %s300_s30, %s464_s0 }
  0x17   :  { %p306_p10 = pnand %p304_p9, %p301_p8 }
  0x19   :  { %309 = shalt.err (!%p306_p10)
}
  0x1a   :  { %s310_s8 = scalar_lea.vmem %s400_s15, 128  ;;  %p315_p12 = scmp.lt.s32.totalorder %s400_s15, %s400_s15 }
  0x1b   :  { %p311_p11 = scmp.ne.s32.totalorder %s400_s15, %s310_s8  ;;  %p316_p13 = scmp.lt.s32.totalorder %s310_s8, %s310_s8 }
  0x1d   :  { %p317_p0 = por %p316_p13, %p315_p12 }
  0x1f   :  { %p318_p1 = pnand %p317_p0, %p311_p11 }
  0x21   :  { %321 = shalt.err (!%p318_p1)
}
  0x22   :  { %22 = dma.hbm_to_vmem [thread:$0]  %s464_s0, 128, %s400_s15, [#allocation3], %s374_s24, %s374_s24, %s375_s25  }
  0x23   :  { %s376_s10 = smov [#allocation7]   ;;  %s322_s14 = scalar_lea.hbm %s466_s2, 32 }
  0x24   :  { %s41_s11 = sshll.u32 %s376_s10, 4  ;;  %p323_p2 = scmp.ne.s32.totalorder %s466_s2, %s322_s14  ;;  %s42_s11 = int_to_ptr.vmem [resolvable:$true] %s41_s11 }
  0x25   :  { %p326_p3 = scmp.lt.u32.totalorder %s322_s14, %s466_s2 }
  0x27   :  { %p328_p4 = pnand %p326_p3, %p323_p2 }
  0x29   :  { %331 = shalt.err (!%p328_p4)
}
  0x2a   :  { %s332_s20 = scalar_lea.vmem %s42_s11, 32  ;;  %p337_p6 = scmp.lt.s32.totalorder %s42_s11, %s42_s11 }
  0x2b   :  { %p333_p5 = scmp.ne.s32.totalorder %s42_s11, %s332_s20  ;;  %p338_p7 = scmp.lt.s32.totalorder %s332_s20, %s332_s20 }
  0x2d   :  { %p339_p8 = por %p338_p7, %p337_p6 }
  0x2f   :  { %p340_p9 = pnand %p339_p8, %p333_p5 }
  0x31   :  { %343 = shalt.err (!%p340_p9)
}
  0x32   :  { %44 = dma.hbm_to_vmem [thread:$0]  %s466_s2, 32, %s42_s11, [#allocation6]  }
  0x33   :  { %366 = dma.done.wait [#allocation3], 128  }
  0x34   :  { %367 = vsyncadd [#allocation3], 4294967168 }
  0x35   :  { %368 = dma.done.wait [#allocation6], 1056  }
  0x36   :  { %369 = vsyncadd [#allocation6], 4294966240  ;;  %v377_v0 = vmov 0.0   ;;  %vm378_vm0 = vmmov 0   ;;  %v269_v1 = vld [vmem:[#allocation5] sm:$0xff]   ;;  %v270_v2 = vld [vmem:[#allocation5 + $0x8] sm:$0xff]  }
  0x37   :  { %241 = vmatprep.subr.bf16.mxu0 %v377_v0  ;;  %257 = vmatprep.mubr.msk.bf16.mxu0 %vm378_vm0, %v377_v0  ;;  %v271_v3 = vld [vmem:[#allocation5 + $0x10] sm:$0xff]   ;;  %v272_v4 = vld [vmem:[#allocation5 + $0x18] sm:$0xff]   ;;  %v273_v5 = vld [vmem:[#allocation5 + $0x20] sm:$0xff]   ;;  %s379_s2 = smov [#allocation8]  }
  0x38   :  { %242 = vmatpush3.bf16.msra.mxu0 %v269_v1  ;;  %v274_v6 = vld [vmem:[#allocation5 + $0x28] sm:$0xff]   ;;  %v275_v7 = vld [vmem:[#allocation5 + $0x30] sm:$0xff]   ;;  %v276_v8 = vld [vmem:[#allocation5 + $0x38] sm:$0xff]   ;;  %s199_s21 = sshll.u32 %s379_s2, 4  ;;  %s200_s21 = int_to_ptr.vmem [resolvable:$true] %s199_s21 }
  0x39   :  { %243 = vmatprep.subr.bf16.mxu0 %v377_v0  ;;  %v277_v9 = vld [vmem:[#allocation2] sm:$0xff]   ;;  %v221_v10 = vld [vmem:[#allocation7] ss:$0 sm:$0xff]  ;;  %v222_v12 = vld [vmem:[#allocation7 + $0x1] ss:$0 sm:$0xff]  ;;  %s344_s22 = scalar_lea.vmem %s200_s21, 128  ;;  %p349_p11 = scmp.lt.s32.totalorder %s200_s21, %s200_s21 }
  0x3a   :  { %p345_p10 = scmp.ne.s32.totalorder %s200_s21, %s344_s22  ;;  %p350_p12 = scmp.lt.s32.totalorder %s344_s22, %s344_s22 }
  0x3c   :  { %244 = vmatpush3.bf16.msra.mxu0 %v270_v2  ;;  %p351_p13 = por %p350_p12, %p349_p11 }
  0x3d   :  { %245 = vmatprep.subr.bf16.mxu0 %v377_v0 }
  0x3e   :  { %p352_p0 = pnand %p351_p13, %p345_p10 }
  0x40   :  { %246 = vmatpush3.bf16.msra.mxu0 %v271_v3 }
  0x41   :  { %247 = vmatprep.subr.bf16.mxu0 %v377_v0 }
  0x44   :  { %248 = vmatpush3.bf16.msra.mxu0 %v272_v4 }
  0x45   :  { %249 = vmatprep.subr.bf16.mxu0 %v377_v0 }
  0x48   :  { %250 = vmatpush3.bf16.msra.mxu0 %v273_v5 }
  0x49   :  { %251 = vmatprep.subr.bf16.mxu0 %v377_v0 }
  0x4c   :  { %252 = vmatpush3.bf16.msra.mxu0 %v274_v6 }
  0x4d   :  { %253 = vmatprep.subr.bf16.mxu0 %v377_v0 }
  0x50   :  { %254 = vmatpush3.bf16.msra.mxu0 %v275_v7 }
  0x51   :  { %255 = vmatprep.subr.bf16.mxu0 %v377_v0 }
  0x54   :  { %256 = vmatpush3.bf16.msra.mxu0 %v276_v8 }
  0x57   :  { %258 = vmatmul.mubr.bf16.vlgmr.msra.gmra.mrb[0].mxu0 %v277_v9 }
 0x12a   :  { %v161_v11 = vpop.f32.mrb[0].mxu0 }
 0x12b   :  { %v173_v13 = vmul.f32 %v221_v10, %v161_v11  ;;  %v259_v14 = vpop.f32.mrb[1].mxu0 }
 0x12c   :  { %v164_v15 = vpop.f32.mrb[2].mxu0 }
 0x12d   :  { %v180_v16 = vadd.f32 %v222_v12, %v173_v13  ;;  %v174_v17 = vmul.f32 %v221_v10, %v164_v15  ;;  %v260_v18 = vpop.f32.mrb[3].mxu0 }
 0x12f   :  { %v181_v19 = vadd.f32 %v222_v12, %v174_v17  ;;  %v182_v20 = vmax.f32 %v180_v16, 0.0 }
 0x131   :  { %v183_v21 = vmax.f32 %v181_v19, 0.0 }
 0x133   :  { %v230_v22 = vpack.c.bf16 %v183_v21, %v182_v20 }
 0x135   :  { %231 = vst [vmem:[#allocation8] sm:$0xff] %v230_v22  }
 0x136   :  { %355 = shalt.err (!%p352_p0)
}
 0x137   :  { %s356_s27 = scalar_lea.hbm %s467_s3, 128 }
 0x138   :  { %p357_p1 = scmp.ne.s32.totalorder %s467_s3, %s356_s27  ;;  %p360_p2 = scmp.lt.u32.totalorder %s356_s27, %s467_s3 }
 0x13a   :  { %p362_p3 = pnand %p360_p2, %p357_p1 }
 0x13c   :  { %365 = shalt.err (!%p362_p3)
}
 0x13d   :  { %205 = dma.vmem_to_hbm [thread:$0]  %s200_s21, 128, %s467_s3, [#allocation4], %s374_s24, %s374_s24, %s375_s25  }
 0x13e   :  { %370 = dma.done.wait [#allocation4], 128  }
 0x13f   :  { %371 = vsyncadd [#allocation4], 4294967168 }
 0x140   :  { %209 = vsyncpa [#allocation3], 1 }
 0x141   :  { %210 = vsyncpa [#allocation6], 1 }
 0x142   :  { %211 = vsyncpa [#allocation4], 1 }

</bundles_post_ra>
